<compile_context>
chip_gen: v5e
topology: v5e:2x2
jax: 0.10.0
libtpu: 0.0.40
codegen_flags: <defaults>
</compile_context>

<pallas_src>
import numpy as np

import jax
import jax.numpy as jnp
from jax.experimental import pallas as pl
from jax.experimental.pallas import tpu as pltpu

SMOOTH = 1e-5
LANE = 128

# Stand-ins for the argparse `args` globals used by the original forward().
TASK_WEIGHT_MODE = "train"   # 'alpha' or 'train'
ALPHA = 0.5


def _seg_stats_kernel(mask_ref, pmask_ref, part_ref):
    """One grid step over a (B, S, 128) spatial tile.

    part_ref block: (1, 4*B, 128) VMEM-resident, lane-partial accumulator.
      rows [0,   B): BCE-with-logits partial sums (per sample)
      rows [B,  2B): sum(sigmoid(x) * t)
      rows [2B, 3B): sum(sigmoid(x))
      rows [3B, 4B): sum(t)
    """
    k = pl.program_id(1)          # spatial reduction step ("arbitrary")

    @pl.when(k == 0)
    def _init():
        part_ref[...] = jnp.zeros_like(part_ref)

    x = pmask_ref[...].astype(jnp.float32)   # (B, S, 128) logits
    t = mask_ref[...].astype(jnp.float32)    # (B, S, 128) targets

    # Share the single EUP exponential between the numerically stable
    # BCE-with-logits term and the sigmoid needed for the dice statistics.
    e = jnp.exp(-jnp.abs(x))                              # exp(-|x|)
    bce = jnp.maximum(x, 0.0) - x * t + jnp.log1p(e)

    # sigmoid(x) without the exact EUP divide: approx reciprocal + one Newton
    # step on the VPU (EUP already carries exp + log1p per element).
    one_pe = 1.0 + e
    r = pl.reciprocal(one_pe, approx=True)
    inv = r * (2.0 - one_pe * r)                          # ~1 ulp of 1/(1+e)
    p = jnp.where(x >= 0.0, inv, e * inv)                 # stable sigmoid(x)

    # Lane-partial accumulation: sublane-axis (S) sums only; one fused
    # (4*B, 128) RMW per step instead of four partial-vreg RMWs.
    stacked = jnp.concatenate(
        [jnp.sum(bce, axis=1),
         jnp.sum(p * t, axis=1),
         jnp.sum(p, axis=1),
         jnp.sum(t, axis=1)], axis=0)                     # (4*B, 128)
    part_ref[0] += stacked


def _device_info():
    """(physical VMEM bytes, chip has >=2 TensorCores) — best effort, safe default."""
    vmem = 128 * 1024 * 1024
    two_tc = False
    try:
        info = pltpu.get_tpu_info()
        v = getattr(info, "vmem_capacity_bytes", None)
        if v:
            vmem = int(v)
        for attr in ("num_tensorcores", "tensorcore_count", "num_cores"):
            n = getattr(info, attr, None)
            if n is not None:
                two_tc = int(n) >= 2
                break
    except Exception:
        pass
    try:
        kind = jax.devices()[0].device_kind.lower()
        if "v7" in kind:                       # 2 TCs / chip, 64 MiB VMEM per TC
            two_tc = True
            vmem = min(vmem, 64 * 1024 * 1024)
    except Exception:
        pass
    return vmem, two_tc


def _choose_tiling(batch, rows, itemsize, vmem_bytes, two_tc):
    """Pick (num_core_splits, rows_per_step) for the (B, rows, 128) layout."""
    itemsize = int(itemsize)
    # Native sublane tile of the streamed dtype: 8 (f32), 16 (bf16), 32 (int8/fp8).
    sub = 8 * max(1, 4 // itemsize)
    # Pipeline buffers: 2 streamed inputs x 2 buffers each. Budget ~1/4 of
    # physical VMEM (32 MiB on 128-MiB v5e/v6e, 16 MiB on 64-MiB v7x).
    budget_bytes = min(vmem_bytes // 4, 32 * 1024 * 1024)
    cap = budget_bytes // (2 * 2 * batch * LANE * itemsize)
    cap -= cap % sub
    cap = max(sub, min(2048, cap))

    # 2-way core split only on chips that actually have a second TensorCore.
    nc = 2 if (two_tc and rows >= 2 * sub and rows % (2 * sub) == 0) else 1
    rows_per_core = rows // nc
    if rows_per_core % sub != 0:
        # Only reachable with nc == 1; a block spanning every row is always
        # legal (block dim == full array dim).
        return 1, rows
    s = min(cap, rows_per_core)
    s -= s % sub
    s = max(s, sub)
    while rows_per_core % s != 0:
        s -= sub
    return nc, s


def multitask_losses(label, pred_label, mask, pred_mask):
    """Returns (cls_loss, seg_loss); per-pixel reductions run in one Pallas kernel."""
    assert mask.shape == pred_mask.shape
    B = pred_mask.shape[0]
    hw = int(np.prod(pred_mask.shape[1:]))
    assert hw % LANE == 0, (
        "flattened spatial size must be a multiple of 128 "
        "(TODO(synk): pad + mask the tail for arbitrary H*W)")
    rows = hw // LANE

    # No f32 materialization here: stream inputs in their native dtype
    # (bf16 / int8 masks halve/quarter HBM traffic on bandwidth-bound parts).
    mask3 = mask.reshape(B, rows, LANE)
    pmask3 = pred_mask.reshape(B, rows, LANE)

    itemsize = max(np.dtype(mask3.dtype).itemsize, np.dtype(pmask3.dtype).itemsize)
    vmem_bytes, two_tc = _device_info()
    nc, s = _choose_tiling(B, rows, itemsize, vmem_bytes, two_tc)
    steps = rows // (nc * s)

    # VMEM limit derived from the chosen tiling: 2 streams x 2 buffers,
    # double-buffered f32 accumulator slab, plus headroom; clamped under VMEM.
    stream_bytes = 2 * 2 * B * s * LANE * int(itemsize)
    acc_bytes = 2 * 4 * B * LANE * 4
    vmem_limit = stream_bytes + acc_bytes + 4 * 1024 * 1024
    vmem_limit = int(min(max(vmem_limit, 16 * 1024 * 1024), (vmem_bytes * 3) // 4))

    # NOTE: pipeline_mode=pl.Buffered(3) on the two streaming inputs is an option
    # if a profile shows exposed DMA at this tile size; otherwise depth 2 and a
    # larger s is the better use of VMEM.
    part = pl.pallas_call(
        _seg_stats_kernel,
        out_shape=jax.ShapeDtypeStruct((nc, 4 * B, LANE), jnp.float32),
        grid_spec=pltpu.PrefetchScalarGridSpec(
            num_scalar_prefetch=0,
            grid=(nc, steps),
            in_specs=[
                pl.BlockSpec((B, s, LANE), lambda c, k: (0, c * steps + k, 0)),
                pl.BlockSpec((B, s, LANE), lambda c, k: (0, c * steps + k, 0)),
            ],
            out_specs=pl.BlockSpec((1, 4 * B, LANE), lambda c, k: (c, 0, 0)),
        ),
        compiler_params=pltpu.CompilerParams(
            dimension_semantics=("parallel", "arbitrary"),
            vmem_limit_bytes=vmem_limit),
    )(mask3, pmask3)

    # Tiny epilogue: combine core partials + the single cross-lane reduce,
    # then the scalar dice / BCE-mean arithmetic.
    stats = jnp.sum(part.reshape(nc, 4, B, LANE), axis=(0, 3))      # (4, B)
    bce_mean = jnp.sum(stats[0]) / float(B * hw)
    dice = (2.0 * stats[1] + SMOOTH) / (stats[2] + stats[3] + SMOOTH)
    seg_loss = 0.5 * bce_mean + (1.0 - jnp.sum(dice) / float(B))

    # Classification head: BCEWithLogitsLoss(pred_label, squeeze(label)).
    # O(B) work — hoisted out of the kernel into plain JAX per the perf review.
    xl = jnp.ravel(pred_label).astype(jnp.float32)
    yl = jnp.ravel(jnp.squeeze(label)).astype(jnp.float32)
    assert xl.shape == yl.shape, "pred_label must match squeeze(label)"
    cls_loss = jnp.mean(jnp.maximum(xl, 0.0) - xl * yl
                        + jnp.log1p(jnp.exp(-jnp.abs(xl))))
    return cls_loss, seg_loss


class MultiTaskLossWrapper:
    """JAX/Pallas re-implementation of the PyTorch MultiTaskLossWrapper forward."""

    def __init__(self, mode, task_num, task_weight_mode=TASK_WEIGHT_MODE, alpha=ALPHA):
        self.mode = mode
        self.task_num = task_num
        self.task_weight_mode = task_weight_mode
        self.alpha = alpha
        if mode == "multitask":
            # Deterministic init: nn.Parameter(torch.tensor((1.0, 1.0)))
            self.log_vars = jnp.array([1.0, 1.0], dtype=jnp.float32)

    def __call__(self, label, pred_label, mask, pred_mask):
        cls_loss, seg_loss = multitask_losses(label, pred_label, mask, pred_mask)
        if self.mode == "classification":
            return cls_loss
        if self.mode == "segmentation":
            return seg_loss
        # multitask — scalar weighting is plain-JAX scalar glue.
        if self.task_weight_mode == "alpha":
            loss = self.alpha * seg_loss + (1.0 - self.alpha) * cls_loss
            return seg_loss, cls_loss, loss
        else:  # 'train'
            lv = self.log_vars
            # torch.sum(scalar, -1) and torch.mean(scalar) are identities on 0-d tensors.
            seg_loss_1 = 0.5 * jnp.exp(-lv[0]) * seg_loss + lv[0]
            cls_loss_1 = 0.5 * jnp.exp(-lv[1]) * cls_loss + lv[1]
            loss = seg_loss_1 + cls_loss_1
            return seg_loss, cls_loss, loss


def _reference(label, pred_label, mask, pred_mask, log_vars):
    """Pure-JAX reference for correctness checking."""
    def bce_with_logits_mean(x, y):
        x = x.astype(jnp.float32); y = y.astype(jnp.float32)
        return jnp.mean(jnp.maximum(x, 0.0) - x * y + jnp.log1p(jnp.exp(-jnp.abs(x))))

    cls_loss = bce_with_logits_mean(pred_label, jnp.squeeze(label))
    bce = bce_with_logits_mean(pred_mask, mask)
    B = mask.shape[0]
    p = jax.nn.sigmoid(pred_mask.astype(jnp.float32)).reshape(B, -1)
    t = mask.astype(jnp.float32).reshape(B, -1)
    dice = (2.0 * (p * t).sum(1) + SMOOTH) / (p.sum(1) + t.sum(1) + SMOOTH)
    seg_loss = 0.5 * bce + (1.0 - dice.sum() / B)
    seg_1 = 0.5 * jnp.exp(-log_vars[0]) * seg_loss + log_vars[0]
    cls_1 = 0.5 * jnp.exp(-log_vars[1]) * cls_loss + log_vars[1]
    return seg_loss, cls_loss, seg_1 + cls_1


if __name__ == "__main__":
    key = jax.random.PRNGKey(0)
    wrapper = MultiTaskLossWrapper(mode="multitask", task_num=2,
                                   task_weight_mode="train")

    # Three small configs: the tiny single-block path, the tiled f32 path, and
    # the native-bf16 streaming path (kernel upcasts in-register).
    configs = [
        (2, 16, 16, jnp.float32, 1e-5),
        (4, 64, 64, jnp.float32, 1e-5),
        (2, 64, 64, jnp.bfloat16, 1e-4),
    ]
    for (B, H, W, dt, tol) in configs:
        k1, k2, k3, k4, key = jax.random.split(key, 5)
        label = (jax.random.uniform(k1, (B, 1)) > 0.5).astype(jnp.float32)      # (B, 1)
        pred_label = jax.random.normal(k2, (B,), dtype=jnp.float32)             # (B,)
        mask = (jax.random.uniform(k3, (B, 1, H, W)) > 0.5).astype(dt)          # NCHW
        pred_mask = jax.random.normal(k4, (B, 1, H, W), dtype=jnp.float32).astype(dt)

        seg_loss, cls_loss, loss = wrapper(label, pred_label, mask, pred_mask)
        jax.block_until_ready((seg_loss, cls_loss, loss))

        ref_seg, ref_cls, ref_loss = _reference(label, pred_label, mask, pred_mask,
                                                wrapper.log_vars)
        assert np.allclose(np.asarray(seg_loss), np.asarray(ref_seg), rtol=tol, atol=tol)
        assert np.allclose(np.asarray(cls_loss), np.asarray(ref_cls), rtol=tol, atol=tol)
        assert np.allclose(np.asarray(loss), np.asarray(ref_loss), rtol=tol, atol=tol)

    print("KERNEL_OK")
</pallas_src>

<mosaic_0001>
module attributes {stable_mosaic.version = 11 : i64} {
  func.func @_seg_stats_kernel(%arg0: i32, %arg1: i32, %arg2: memref<2x2x128xf32, #tpu.memory_space<vmem>>, %arg3: memref<2x2x128xf32, #tpu.memory_space<vmem>>, %arg4: memref<1x8x128xf32, #tpu.memory_space<vmem>>) attributes {dimension_semantics = [#tpu.dimension_semantics<parallel>, #tpu.dimension_semantics<arbitrary>], iteration_bounds = array<i64: 1, 1>, scalar_prefetch = 0 : i64, scratch_operands = 0 : i64, tpu.core_type = #tpu.core_type<tc>, window_params = [{transform_indices = @transform_0, window_bounds = array<i64: 2, 2, 128>}, {transform_indices = @transform_1, window_bounds = array<i64: 2, 2, 128>}, {transform_indices = @transform_2, window_bounds = array<i64: 1, 8, 128>}]} {
    %c0_i32 = arith.constant 0 : i32
    %0 = arith.cmpi eq, %arg1, %c0_i32 : i32
    %1 = arith.extui %0 : i1 to i32
    %c0_i32_0 = arith.constant 0 : i32
    %2 = arith.cmpi ne, %1, %c0_i32_0 : i32
    scf.if %2 {
      %cst_20 = arith.constant 0.000000e+00 : f32
      %38 = vector.broadcast %cst_20 : f32 to vector<1x8x128xf32>
      %c0_21 = arith.constant 0 : index
      %c0_22 = arith.constant 0 : index
      %c0_23 = arith.constant 0 : index
      %39 = vector.load %arg4[%c0_21, %c0_22, %c0_23] : memref<1x8x128xf32, #tpu.memory_space<vmem>>, vector<1x8x128xf32>
      tpu.vector_store %arg4[%c0_21, %c0_22, %c0_23], %38 {strides = array<i32>} : memref<1x8x128xf32, #tpu.memory_space<vmem>>, vector<1x8x128xf32>,
    } else {
    }
    %c0 = arith.constant 0 : index
    %c0_1 = arith.constant 0 : index
    %c0_2 = arith.constant 0 : index
    %3 = vector.load %arg3[%c0, %c0_1, %c0_2] : memref<2x2x128xf32, #tpu.memory_space<vmem>>, vector<2x2x128xf32>
    %c0_3 = arith.constant 0 : index
    %c0_4 = arith.constant 0 : index
    %c0_5 = arith.constant 0 : index
    %4 = vector.load %arg2[%c0_3, %c0_4, %c0_5] : memref<2x2x128xf32, #tpu.memory_space<vmem>>, vector<2x2x128xf32>
    %5 = math.absf %3 : vector<2x2x128xf32>
    %cst = arith.constant 0.000000e+00 : f32
    %6 = vector.broadcast %cst : f32 to vector<2x2x128xf32>
    %7 = arith.subf %6, %5 : vector<2x2x128xf32>
    %8 = math.exp %7 : vector<2x2x128xf32>
    %cst_6 = arith.constant 0.000000e+00 : f32
    %9 = vector.broadcast %cst_6 : f32 to vector<2x2x128xf32>
    %10 = arith.maximumf %3, %9 : vector<2x2x128xf32>
    %11 = arith.mulf %3, %4 : vector<2x2x128xf32>
    %12 = arith.subf %10, %11 : vector<2x2x128xf32>
    %13 = math.log1p %8 : vector<2x2x128xf32>
    %14 = arith.addf %12, %13 : vector<2x2x128xf32>
    %cst_7 = arith.constant 1.000000e+00 : f32
    %15 = vector.broadcast %cst_7 : f32 to vector<2x2x128xf32>
    %16 = arith.addf %15, %8 : vector<2x2x128xf32>
    %17 = tpu.reciprocal %16 {approx = true} : vector<2x2x128xf32> -> vector<2x2x128xf32>
    %18 = arith.mulf %16, %17 : vector<2x2x128xf32>
    %cst_8 = arith.constant 2.000000e+00 : f32
    %19 = vector.broadcast %cst_8 : f32 to vector<2x2x128xf32>
    %20 = arith.subf %19, %18 : vector<2x2x128xf32>
    %21 = arith.mulf %17, %20 : vector<2x2x128xf32>
    %cst_9 = arith.constant 0.000000e+00 : f32
    %22 = vector.broadcast %cst_9 : f32 to vector<2x2x128xf32>
    %23 = arith.cmpf oge, %3, %22 : vector<2x2x128xf32>
    %24 = arith.mulf %8, %21 : vector<2x2x128xf32>
    %25 = arith.select %23, %21, %24 : vector<2x2x128xi1>, vector<2x2x128xf32>
    %cst_10 = arith.constant dense<0.000000e+00> : vector<2x128xf32>
    %26 = vector.multi_reduction <add>, %14, %cst_10 [1] : vector<2x2x128xf32> to vector<2x128xf32>
    %27 = arith.mulf %25, %4 : vector<2x2x128xf32>
    %cst_11 = arith.constant dense<0.000000e+00> : vector<2x128xf32>
    %28 = vector.multi_reduction <add>, %27, %cst_11 [1] : vector<2x2x128xf32> to vector<2x128xf32>
    %cst_12 = arith.constant dense<0.000000e+00> : vector<2x128xf32>
    %29 = vector.multi_reduction <add>, %25, %cst_12 [1] : vector<2x2x128xf32> to vector<2x128xf32>
    %cst_13 = arith.constant dense<0.000000e+00> : vector<2x128xf32>
    %30 = vector.multi_reduction <add>, %4, %cst_13 [1] : vector<2x2x128xf32> to vector<2x128xf32>
    %31 = tpu.concatenate %26, %28, %29, %30 in 0 : vector<2x128xf32>, vector<2x128xf32>, vector<2x128xf32>, vector<2x128xf32> -> vector<8x128xf32>
    %c0_14 = arith.constant 0 : index
    %c0_15 = arith.constant 0 : index
    %c0_16 = arith.constant 0 : index
    %32 = vector.load %arg4[%c0_14, %c0_15, %c0_16] : memref<1x8x128xf32, #tpu.memory_space<vmem>>, vector<1x8x128xf32>
    %33 = vector.shape_cast %32 : vector<1x8x128xf32> to vector<8x128xf32>
    %34 = arith.addf %33, %31 : vector<8x128xf32>
    %c0_17 = arith.constant 0 : index
    %c0_18 = arith.constant 0 : index
    %c0_19 = arith.constant 0 : index
    %35 = vector.load %arg4[%c0_17, %c0_18, %c0_19] : memref<1x8x128xf32, #tpu.memory_space<vmem>>, vector<1x8x128xf32>
    %36 = vector.shape_cast %35 : vector<1x8x128xf32> to vector<8x128xf32>
    %37 = vector.shape_cast %34 : vector<8x128xf32> to vector<1x8x128xf32>
    tpu.vector_store %arg4[%c0_17, %c0_18, %c0_19], %37 {strides = array<i32>} : memref<1x8x128xf32, #tpu.memory_space<vmem>>, vector<1x8x128xf32>,
    return
  }
  func.func @transform_0(%arg0: i32, %arg1: i32) -> (i32, i32, i32) {
    %c1_i32 = arith.constant 1 : i32
    %0 = arith.muli %arg0, %c1_i32 : i32
    %1 = arith.addi %0, %arg1 : i32
    %c0_i32 = arith.constant 0 : i32
    %c0_i32_0 = arith.constant 0 : i32
    %c0_i32_1 = arith.constant 0 : i32
    return %c0_i32, %1, %c0_i32_0 : i32, i32, i32
  }
  func.func @transform_1(%arg0: i32, %arg1: i32) -> (i32, i32, i32) {
    %c1_i32 = arith.constant 1 : i32
    %0 = arith.muli %arg0, %c1_i32 : i32
    %1 = arith.addi %0, %arg1 : i32
    %c0_i32 = arith.constant 0 : i32
    %c0_i32_0 = arith.constant 0 : i32
    %c0_i32_1 = arith.constant 0 : i32
    return %c0_i32, %1, %c0_i32_0 : i32, i32, i32
  }
  func.func @transform_2(%arg0: i32, %arg1: i32) -> (i32, i32, i32) {
    %c0_i32 = arith.constant 0 : i32
    %c0_i32_0 = arith.constant 0 : i32
    %c0_i32_1 = arith.constant 0 : i32
    return %arg0, %c0_i32, %c0_i32_0 : i32, i32, i32
  }
}

</mosaic_0001>

<bundles_post_ra>
// kernel: tpu_custom_call.1
= control target key start
LH: loop header
LB: loop body
LE: loop exit
PB: predicated region body
PF: predicated region fallthrough
CT: control target
= control target key end

     0   :  { %7 = vsyncpa [#allocation3], 0  ;;  %s367_s0 = inlined_call_operand.hbm [shape: f32[2,2,128], index: 0, kind: input, shape index: {}]   ;;  %s368_s1 = inlined_call_operand.hbm [shape: f32[2,2,128], index: 1, kind: input, shape index: {}]   ;;  %s369_s2 = inlined_call_operand.hbm [shape: f32[1,8,128], index: 2, kind: output, shape index: {}]  }
   0x1   :  { %8 = vsyncpa [#allocation6], 0 }
   0x2   :  { %9 = vsyncpa [#allocation4], 0  ;;  %s17_s11 = sshll.u32 %s367_s0, 4  ;;  %s312_s12 = smov [#allocation2]   ;;  %s18_s11 = int_to_ptr.hbm [resolvable:$true] %s17_s11 }
   0x3   :  { %s19_s13 = sshll.u32 %s312_s12, 4  ;;  %s33_s16 = sshll.u32 %s368_s1, 4  ;;  %s20_s13 = int_to_ptr.vmem [resolvable:$true] %s19_s13  ;;  %s34_s16 = int_to_ptr.hbm [resolvable:$true] %s33_s16 }
   0x4   :  { %s313_s17 = smov 32   ;;  %s314_s18 = smov 2  }
   0x5   :  { %25 = dma.hbm_to_vmem [thread:$0]  %s18_s11, 64, %s20_s13, [#allocation3], %s313_s17, %s313_s17, %s314_s18  }
   0x6   :  { %s315_s19 = smov [#allocation5]  }
   0x7   :  { %s35_s20 = sshll.u32 %s315_s19, 4  ;;  %s36_s20 = int_to_ptr.vmem [resolvable:$true] %s35_s20 }
   0x8   :  { %41 = dma.hbm_to_vmem [thread:$0]  %s34_s16, 64, %s36_s20, [#allocation6], %s313_s17, %s313_s17, %s314_s18  }
   0x9   :  { %306 = dma.done.wait [#allocation3], 64  }
   0xa   :  { %307 = vsyncadd [#allocation3], 4294967232 }
   0xb   :  { %308 = dma.done.wait [#allocation6], 64  }
   0xc   :  { %309 = vsyncadd [#allocation6], 4294967232  ;;  %v338_v0 = vld [vmem:[#allocation5] sm:$0x3]  ;;  %v340_v1 = vld [vmem:[#allocation5 + $0x2] sm:$0x3] }
   0xd   :  { %v61_v2 = vand.u32 2147483647, %v338_v0  ;;  %v62_v3 = vand.u32 2147483647, %v340_v1  ;;  %v344_v10 = vld [vmem:[#allocation2] sm:$0x3] }
   0xe   :  { %v60_v15 = vld [vmem:[#allocation2 + $0x2] sm:$0x3]  ;;  %v71_v16 = vmul.f32 %v344_v10, %v338_v0  ;;  %v69_v18 = vmax.f32 %v338_v0, 0.0  ;;  %v70_v21 = vmax.f32 %v340_v1, 0.0  ;;  %vm111_vm0 = vcmask 1041408   ;;  %s316_s0 = smov [#allocation7]  }
   0xf   :  { %v63_v4 = vsub.f32 0.0, %v61_v2  ;;  %v64_v5 = vsub.f32 0.0, %v62_v3  ;;  %v72_v22 = vmul.f32 %v60_v15, %v340_v1  ;;  %v156_v25 = vsel %vm111_vm0, %v344_v10, 0.0  ;;  %s203_s1 = sshll.u32 %s316_s0, 4  ;;  %s205_s23 = sshll.u32 %s369_s2, 4  ;;  %s204_s1 = int_to_ptr.vmem [resolvable:$true] %s203_s1  ;;  %s206_s23 = int_to_ptr.hbm [resolvable:$true] %s205_s23 }
  0x10   :  { %v73_v27 = vsub.f32 %v69_v18, %v71_v16  ;;  %v163_v29 = vsel %vm111_vm0, %v60_v15, 0.0  ;;  %v157_v35 = vrot.slane %v156_v25, 4  ;;  %vm105_vm3 = vcmp.ge.f32.partialorder %v338_v0, 0.0 }
  0x11   :  { %v65_v6 = vmul.f32 1.442695, %v63_v4  ;;  %v67_v7 = vmul.f32 1.442695, %v64_v5  ;;  %v74_v31 = vsub.f32 %v70_v21, %v72_v22  ;;  %v164_v39 = vrot.slane %v163_v29, 4 }
  0x12   :  { %v158_v47 = vadd.f32 %v157_v35, %v156_v25  ;;  %vm106_vm4 = vcmp.ge.f32.partialorder %v340_v1, 0.0  ;;  %vm172_vm5 = vcmask 1041409   ;;  %vm182_vm6 = vcmask 1045509  }
  0x13   :  { %222 = vpow2.f32 %v65_v6  ;;  %v165_v51 = vadd.f32 %v164_v39, %v163_v29  ;;  %vm177_vm7 = vcmask 1043459   ;;  %vm187_vm8 = vcmask 1047559  }
  0x14   :  { %224 = vpow2.f32 %v67_v7  ;;  %v159_v60 = vrot.slane %v158_v47, 2  ;;  %vm191_vm9 = vcmask 1043456   ;;  %vm193_vm10 = vcmask 1045504  }
  0x15   :  { %v166_v61 = vrot.slane %v165_v51, 2 }
  0x19   :  { %v223_v8 = vpop.eup %222 }
  0x1a   :  { %v225_v9 = vpop.eup %224  ;;  %v75_v11 = vadd.f32 1.0, %v223_v8  ;;  %v78_v12 = vmul.f32 -0.5, %v223_v8  ;;  %v81_v19 = vand.u32 2147483647, %v223_v8 }
  0x1b   :  { %v84_v13 = vadd.f32 1.0, %v225_v9  ;;  %v87_v14 = vmul.f32 -0.5, %v225_v9  ;;  %v90_v23 = vand.u32 2147483647, %v225_v9 }
  0x1c   :  { %226 = vlog2.f32 %v75_v11  ;;  %v79_v17 = vadd.f32 1.0, %v78_v12  ;;  %vm82_vm1 = vcmp.lt.f32.partialorder %v81_v19, 0.0004427343 }
  0x1d   :  { %228 = vlog2.f32 %v84_v13  ;;  %v88_v20 = vadd.f32 1.0, %v87_v14  ;;  %vm91_vm2 = vcmp.lt.f32.partialorder %v90_v23, 0.0004427343 }
  0x1e   :  { %230 = vrcp.f32 %v75_v11  ;;  %v80_v24 = vmul.f32 %v223_v8, %v79_v17  ;;  %v167_v17 = vadd.f32 %v166_v61, %v165_v51 }
  0x1f   :  { %232 = vrcp.f32 %v84_v13  ;;  %v89_v28 = vmul.f32 %v225_v9, %v88_v20 }
  0x22   :  { %v227_v26 = vpop.eup %226 }
  0x23   :  { %v229_v30 = vpop.eup %228  ;;  %v77_v32 = vmul.f32 0.6931472, %v227_v26 }
  0x24   :  { %v231_v33 = vpop.eup %230  ;;  %v86_v34 = vmul.f32 0.6931472, %v229_v30 }
  0x25   :  { %v233_v36 = vpop.eup %232  ;;  %v83_v37 = vsel %vm82_vm1, %v80_v24, %v77_v32  ;;  %v99_v38 = vmul.f32 %v231_v33, %v75_v11 }
  0x26   :  { %v92_v40 = vsel %vm91_vm2, %v89_v28, %v86_v34  ;;  %v93_v41 = vadd.f32 %v83_v37, %v73_v27  ;;  %v100_v42 = vmul.f32 %v233_v36, %v84_v13  ;;  %v160_v13 = vadd.f32 %v159_v60, %v158_v47 }
  0x27   :  { %v94_v43 = vadd.f32 %v92_v40, %v74_v31  ;;  %v101_v44 = vsub.f32 2.0, %v99_v38  ;;  %v168_v27 = vrot.slane %v167_v17, 1 }
  0x28   :  { %v102_v45 = vsub.f32 2.0, %v100_v42  ;;  %v112_v46 = vsel %vm111_vm0, %v93_v41, 0.0  ;;  %v161_v24 = vrot.slane %v160_v13, 1 }
  0x29   :  { %v103_v48 = vmul.f32 %v231_v33, %v101_v44  ;;  %v113_v49 = vrot.slane %v112_v46, 4  ;;  %v119_v50 = vsel %vm111_vm0, %v94_v43, 0.0  ;;  %v169_v39 = vadd.f32 %v168_v27, %v167_v17 }
  0x2a   :  { %v104_v52 = vmul.f32 %v233_v36, %v102_v45  ;;  %v120_v53 = vrot.slane %v119_v50, 4  ;;  %v162_v36 = vadd.f32 %v161_v24, %v160_v13 }
  0x2b   :  { %v107_v54 = vmul.f32 %v223_v8, %v103_v48  ;;  %v114_v55 = vadd.f32 %v113_v49, %v112_v46 }
  0x2c   :  { %v108_v56 = vmul.f32 %v225_v9, %v104_v52  ;;  %v121_v57 = vadd.f32 %v120_v53, %v119_v50  ;;  %v188_v45 = vsel %vm187_vm8, %v169_v39, %v162_v36 }
  0x2d   :  { %v109_v58 = vsel %vm105_vm3, %v103_v48, %v107_v54  ;;  %v115_v59 = vrot.slane %v114_v55, 2 }
  0x2e   :  { %v110_v62 = vsel %vm106_vm4, %v104_v52, %v108_v56  ;;  %v122_v63 = vrot.slane %v121_v57, 2  ;;  %v126_v2 = vmul.f32 %v109_v58, %v344_v10  ;;  %v142_v3 = vsel %vm111_vm0, %v109_v58, 0.0 }
  0x2f   :  { %v127_v4 = vmul.f32 %v110_v62, %v60_v15  ;;  %v143_v5 = vrot.slane %v142_v3, 4  ;;  %v149_v0 = vsel %vm111_vm0, %v110_v62, 0.0  ;;  %v116_v6 = vadd.f32 %v115_v59, %v114_v55 }
  0x30   :  { %v123_v1 = vadd.f32 %v122_v63, %v121_v57  ;;  %v128_v7 = vsel %vm111_vm0, %v126_v2, 0.0  ;;  %v150_v8 = vrot.slane %v149_v0, 4 }
  0x31   :  { %v129_v9 = vrot.slane %v128_v7, 4  ;;  %v135_v11 = vsel %vm111_vm0, %v127_v4, 0.0  ;;  %v144_v12 = vadd.f32 %v143_v5, %v142_v3  ;;  %v117_v19 = vrot.slane %v116_v6, 1 }
  0x32   :  { %v136_v14 = vrot.slane %v135_v11, 4  ;;  %v151_v16 = vadd.f32 %v150_v8, %v149_v0  ;;  %v124_v15 = vrot.slane %v123_v1, 1 }
  0x33   :  { %v130_v10 = vadd.f32 %v129_v9, %v128_v7  ;;  %v145_v18 = vrot.slane %v144_v12, 2  ;;  %v118_v30 = vadd.f32 %v117_v19, %v116_v6 }
  0x34   :  { %v137_v20 = vadd.f32 %v136_v14, %v135_v11  ;;  %v152_v21 = vrot.slane %v151_v16, 2  ;;  %v125_v31 = vadd.f32 %v124_v15, %v123_v1 }
  0x35   :  { %v131_v22 = vrot.slane %v130_v10, 2  ;;  %v146_v23 = vadd.f32 %v145_v18, %v144_v12 }
  0x36   :  { %v138_v25 = vrot.slane %v137_v20, 2  ;;  %v153_v26 = vadd.f32 %v152_v21, %v151_v16  ;;  %v173_v42 = vsel %vm172_vm5, %v125_v31, %v118_v30 }
  0x37   :  { %v132_v28 = vadd.f32 %v131_v22, %v130_v10  ;;  %v147_v29 = vrot.slane %v146_v23, 1 }
  0x38   :  { %v139_v32 = vadd.f32 %v138_v25, %v137_v20  ;;  %v154_v33 = vrot.slane %v153_v26, 1 }
  0x39   :  { %v133_v34 = vrot.slane %v132_v28, 1  ;;  %v148_v35 = vadd.f32 %v147_v29, %v146_v23 }
  0x3a   :  { %v140_v37 = vrot.slane %v139_v32, 1  ;;  %v155_v38 = vadd.f32 %v154_v33, %v153_v26 }
  0x3b   :  { %v134_v40 = vadd.f32 %v133_v34, %v132_v28 }
  0x3c   :  { %v141_v41 = vadd.f32 %v140_v37, %v139_v32  ;;  %v183_v43 = vsel %vm182_vm6, %v155_v38, %v148_v35 }
  0x3e   :  { %v178_v44 = vsel %vm177_vm7, %v141_v41, %v134_v40 }
  0x3f   :  { %v190_v46 = vsel %vm111_vm0, %v173_v42, %v178_v44 }
  0x40   :  { %v192_v47 = vsel %vm191_vm9, %v190_v46, %v183_v43 }
  0x41   :  { %v194_v48 = vsel %vm193_vm10, %v192_v47, %v188_v45 }
  0x42   :  { %197 = vst [vmem:[#allocation7] sm:$0xff] %v194_v48 }
  0x43   :  { %208 = dma.vmem_to_hbm [thread:$0]  %s204_s1, 128, %s206_s23, [#allocation4]  }
  0x44   :  { %310 = dma.done.wait [#allocation4], 128  }
  0x45   :  { %311 = vsyncadd [#allocation4], 4294967168 }
  0x46   :  { %213 = vsyncpa [#allocation3], 1 }
  0x47   :  { %214 = vsyncpa [#allocation6], 1 }
  0x48   :  { %215 = vsyncpa [#allocation4], 1 }

</bundles_post_ra>
